<compile_context>
chip_gen: v6e
topology: v6e:2x2x1
jax: 0.10.0
libtpu: 0.0.40
codegen_flags: <defaults>
</compile_context>

<pallas_src>
import jax
import jax.numpy as jnp
from jax.experimental import pallas as pl
from jax.experimental.pallas import tpu as pltpu

LANE = 128


def _round_up(x, m):
    return (x + m - 1) // m * m


def mlp_kernel(x_ref, w1_ref, b1_ref, w2_ref, b2_ref, w3_ref, b3_ref, o_ref):
    # Entire 3-layer MLP fused; one batch tile per grid step.
    x = x_ref[...]                                            # (TB, 128) bf16/f32

    h1 = jnp.dot(x, w1_ref[...], preferred_element_type=jnp.float32)
    h1 = jnp.maximum(h1 + b1_ref[...], 0.0)                   # bias + ReLU in f32
    # Dropout(p=0.2): identity in eval mode.

    h2 = jnp.dot(h1.astype(w2_ref.dtype), w2_ref[...],
                 preferred_element_type=jnp.float32)
    h2 = jnp.maximum(h2 + b2_ref[...], 0.0)
    # Dropout(p=0.2): identity in eval mode.

    out = jnp.dot(h2.astype(w3_ref.dtype), w3_ref[...],
                  preferred_element_type=jnp.float32) + b3_ref[...]
    o_ref[...] = out.astype(o_ref.dtype)                      # (TB, 128) f32


def mlp_forward(x, params, *, batch_tile=512, use_bf16=True):
    """x: [B, 76] float32 -> [B, 15] float32."""
    w1, b1, w2, b2, w3, b3 = params
    B, in_sz = x.shape
    h1_sz, h2_sz = w1.shape[1], w2.shape[1]
    out_sz = w3.shape[1]

    # ---- pad feature dims to lane width (dense DMA, unmasked stores) ----
    in_p = _round_up(in_sz, LANE)
    out_p = _round_up(out_sz, LANE)

    # ---- pick batch tile / pad batch to a multiple of it ----
    tile = min(batch_tile, _round_up(B, 8))
    if tile >= 256 and _round_up(B, tile) // tile == 1:
        tile //= 2          # v7x: give the "parallel" axis >=2 steps (2 TCs)
    B_p = _round_up(B, tile)
    grid = (B_p // tile,)

    comp_dtype = jnp.bfloat16 if use_bf16 else jnp.float32

    x_c = jnp.pad(x, ((0, B_p - B), (0, in_p - in_sz))).astype(comp_dtype)
    w1_c = jnp.pad(w1, ((0, in_p - in_sz), (0, 0))).astype(comp_dtype)
    w2_c = w2.astype(comp_dtype)
    w3_c = jnp.pad(w3, ((0, 0), (0, out_p - out_sz))).astype(comp_dtype)
    b3_c = jnp.pad(b3, ((0, 0), (0, out_p - out_sz)))          # biases stay f32

    # ---- cost estimate (advisory for the XLA scheduler) ----
    flops = 2 * B_p * (in_p * h1_sz + h1_sz * h2_sz + h2_sz * out_p)
    param_bytes = sum(int(a.size) * a.dtype.itemsize
                      for a in (w1_c, b1, w2_c, b2, w3_c, b3_c))
    bytes_accessed = (int(x_c.size) * x_c.dtype.itemsize
                      + B_p * out_p * 4 + param_bytes)

    full = lambda arr: pl.BlockSpec(arr.shape, lambda i: (0, 0))

    out_padded = pl.pallas_call(
        mlp_kernel,
        out_shape=jax.ShapeDtypeStruct((B_p, out_p), jnp.float32),
        grid_spec=pltpu.PrefetchScalarGridSpec(
            num_scalar_prefetch=0,
            grid=grid,
            in_specs=[
                pl.BlockSpec((tile, in_p), lambda i: (i, 0)),   # x tile
                full(w1_c), full(b1),
                full(w2_c), full(b2),
                full(w3_c), full(b3_c),
            ],
            out_specs=pl.BlockSpec((tile, out_p), lambda i: (i, 0)),
        ),
        compiler_params=pltpu.CompilerParams(
            dimension_semantics=("parallel",)),
        cost_estimate=pl.CostEstimate(flops=flops, transcendentals=0,
                                      bytes_accessed=bytes_accessed),
    )(x_c, w1_c, b1, w2_c, b2, w3_c, b3_c)

    return out_padded[:B, :out_sz]


def init_params(key, in_sz=76, out_sz=15, layers=(256, 256)):
    """Deterministic init mimicking nn.Linear's U(-1/sqrt(fan_in), +1/sqrt(fan_in))."""
    params = []
    dims = [in_sz] + list(layers) + [out_sz]
    for i in range(len(dims) - 1):
        fan_in, fan_out = dims[i], dims[i + 1]
        key, kw, kb = jax.random.split(key, 3)
        bound = 1.0 / jnp.sqrt(jnp.float32(fan_in))
        # Stored as [in, out] (transpose of PyTorch's [out, in]).
        w = jax.random.uniform(kw, (fan_in, fan_out), jnp.float32,
                               minval=-bound, maxval=bound)
        b = jax.random.uniform(kb, (1, fan_out), jnp.float32,
                               minval=-bound, maxval=bound)
        params.extend([w, b])
    return tuple(params)


def mlp_reference(x, params, compute_dtype=jnp.float32):
    """Pure-JAX reference; compute_dtype mirrors the kernel's operand cast."""
    w1, b1, w2, b2, w3, b3 = params
    c = compute_dtype
    h1 = jnp.maximum(jnp.dot(x.astype(c), w1.astype(c),
                             preferred_element_type=jnp.float32) + b1, 0.0)
    h2 = jnp.maximum(jnp.dot(h1.astype(c), w2.astype(c),
                             preferred_element_type=jnp.float32) + b2, 0.0)
    return jnp.dot(h2.astype(c), w3.astype(c),
                   preferred_element_type=jnp.float32) + b3


if __name__ == "__main__":
    key = jax.random.PRNGKey(0)
    key, kx = jax.random.split(key)

    B, in_sz, out_sz = 256, 76, 15
    x = jax.random.normal(kx, (B, in_sz), jnp.float32)
    params = init_params(key, in_sz=in_sz, out_sz=out_sz, layers=(256, 256))

    out = jax.block_until_ready(mlp_forward(x, params))
    assert out.shape == (B, out_sz)

    # Tight check vs a reference that mirrors the kernel's bf16-operand /
    # f32-accumulate numerics.
    ref_bf16 = mlp_reference(x, params, compute_dtype=jnp.bfloat16)
    assert jnp.allclose(out, ref_bf16, atol=2e-3, rtol=2e-3), \
        float(jnp.max(jnp.abs(out - ref_bf16)))

    # Loose check vs the full-f32 reference (the bf16 operand cast is the only
    # deliberate deviation from the PyTorch module's numerics).
    ref_f32 = mlp_reference(x, params, compute_dtype=jnp.float32)
    assert jnp.allclose(out, ref_f32, atol=5e-2, rtol=5e-2), \
        float(jnp.max(jnp.abs(out - ref_f32)))

    print("KERNEL_OK")
</pallas_src>

<mosaic_0001>
module attributes {stable_mosaic.version = 11 : i64} {
  func.func @mlp_kernel(%arg0: i32, %arg1: memref<128x128xbf16, #tpu.memory_space<vmem>>, %arg2: memref<128x256xbf16, #tpu.memory_space<vmem>>, %arg3: memref<1x256xf32, #tpu.memory_space<vmem>>, %arg4: memref<256x256xbf16, #tpu.memory_space<vmem>>, %arg5: memref<1x256xf32, #tpu.memory_space<vmem>>, %arg6: memref<256x128xbf16, #tpu.memory_space<vmem>>, %arg7: memref<1x128xf32, #tpu.memory_space<vmem>>, %arg8: memref<128x128xf32, #tpu.memory_space<vmem>>) attributes {dimension_semantics = [#tpu.dimension_semantics<parallel>], iteration_bounds = array<i64: 2>, scalar_prefetch = 0 : i64, scratch_operands = 0 : i64, tpu.core_type = #tpu.core_type<tc>, window_params = [{transform_indices = @transform_0, window_bounds = array<i64: 128, 128>}, {pipeline_mode = #tpu.pipeline_mode<synchronous>, transform_indices = @transform_1, window_bounds = array<i64: 128, 256>}, {pipeline_mode = #tpu.pipeline_mode<synchronous>, transform_indices = @transform_2, window_bounds = array<i64: 1, 256>}, {pipeline_mode = #tpu.pipeline_mode<synchronous>, transform_indices = @transform_3, window_bounds = array<i64: 256, 256>}, {pipeline_mode = #tpu.pipeline_mode<synchronous>, transform_indices = @transform_4, window_bounds = array<i64: 1, 256>}, {pipeline_mode = #tpu.pipeline_mode<synchronous>, transform_indices = @transform_5, window_bounds = array<i64: 256, 128>}, {pipeline_mode = #tpu.pipeline_mode<synchronous>, transform_indices = @transform_6, window_bounds = array<i64: 1, 128>}, {transform_indices = @transform_7, window_bounds = array<i64: 128, 128>}]} {
    %c0 = arith.constant 0 : index
    %c0_0 = arith.constant 0 : index
    %0 = vector.load %arg1[%c0, %c0_0] : memref<128x128xbf16, #tpu.memory_space<vmem>>, vector<128x128xbf16>
    %c0_1 = arith.constant 0 : index
    %c0_2 = arith.constant 0 : index
    %1 = vector.load %arg2[%c0_1, %c0_2] : memref<128x256xbf16, #tpu.memory_space<vmem>>, vector<128x256xbf16>
    %cst = arith.constant dense<0.000000e+00> : vector<128x256xf32>
    %2 = tpu.matmul %0, %1, %cst {dimension_numbers = #tpu.dot_dimension_numbers<[1], [0], [0], [1], [0, 0, 1, 1], [], []>} : vector<128x128xbf16>, vector<128x256xbf16>, vector<128x256xf32> -> vector<128x256xf32>
    %c0_3 = arith.constant 0 : index
    %c0_4 = arith.constant 0 : index
    %3 = vector.load %arg3[%c0_3, %c0_4] : memref<1x256xf32, #tpu.memory_space<vmem>>, vector<1x256xf32>
    %4 = vector.broadcast %3 : vector<1x256xf32> to vector<128x256xf32>
    %5 = arith.addf %2, %4 : vector<128x256xf32>
    %cst_5 = arith.constant 0.000000e+00 : f32
    %6 = vector.broadcast %cst_5 : f32 to vector<128x256xf32>
    %7 = arith.maximumf %5, %6 : vector<128x256xf32>
    %8 = arith.truncf %7 : vector<128x256xf32> to vector<128x256xbf16>
    %c0_6 = arith.constant 0 : index
    %c0_7 = arith.constant 0 : index
    %9 = vector.load %arg4[%c0_6, %c0_7] : memref<256x256xbf16, #tpu.memory_space<vmem>>, vector<256x256xbf16>
    %cst_8 = arith.constant dense<0.000000e+00> : vector<128x256xf32>
    %10 = tpu.matmul %8, %9, %cst_8 {dimension_numbers = #tpu.dot_dimension_numbers<[1], [0], [0], [1], [0, 0, 1, 1], [], []>} : vector<128x256xbf16>, vector<256x256xbf16>, vector<128x256xf32> -> vector<128x256xf32>
    %c0_9 = arith.constant 0 : index
    %c0_10 = arith.constant 0 : index
    %11 = vector.load %arg5[%c0_9, %c0_10] : memref<1x256xf32, #tpu.memory_space<vmem>>, vector<1x256xf32>
    %12 = vector.broadcast %11 : vector<1x256xf32> to vector<128x256xf32>
    %13 = arith.addf %10, %12 : vector<128x256xf32>
    %cst_11 = arith.constant 0.000000e+00 : f32
    %14 = vector.broadcast %cst_11 : f32 to vector<128x256xf32>
    %15 = arith.maximumf %13, %14 : vector<128x256xf32>
    %16 = arith.truncf %15 : vector<128x256xf32> to vector<128x256xbf16>
    %c0_12 = arith.constant 0 : index
    %c0_13 = arith.constant 0 : index
    %17 = vector.load %arg6[%c0_12, %c0_13] : memref<256x128xbf16, #tpu.memory_space<vmem>>, vector<256x128xbf16>
    %cst_14 = arith.constant dense<0.000000e+00> : vector<128x128xf32>
    %18 = tpu.matmul %16, %17, %cst_14 {dimension_numbers = #tpu.dot_dimension_numbers<[1], [0], [0], [1], [0, 0, 1, 1], [], []>} : vector<128x256xbf16>, vector<256x128xbf16>, vector<128x128xf32> -> vector<128x128xf32>
    %c0_15 = arith.constant 0 : index
    %c0_16 = arith.constant 0 : index
    %19 = vector.load %arg7[%c0_15, %c0_16] : memref<1x128xf32, #tpu.memory_space<vmem>>, vector<1x128xf32>
    %20 = vector.broadcast %19 : vector<1x128xf32> to vector<128x128xf32>
    %21 = arith.addf %18, %20 : vector<128x128xf32>
    %c0_17 = arith.constant 0 : index
    %c0_18 = arith.constant 0 : index
    %22 = vector.load %arg8[%c0_17, %c0_18] : memref<128x128xf32, #tpu.memory_space<vmem>>, vector<128x128xf32>
    tpu.vector_store %arg8[%c0_17, %c0_18], %21 {strides = array<i32>} : memref<128x128xf32, #tpu.memory_space<vmem>>, vector<128x128xf32>,
    return
  }
  func.func @transform_0(%arg0: i32) -> (i32, i32) {
    %c0_i32 = arith.constant 0 : i32
    %c0_i32_0 = arith.constant 0 : i32
    return %arg0, %c0_i32 : i32, i32
  }
  func.func @transform_1(%arg0: i32) -> (i32, i32) {
    %c0_i32 = arith.constant 0 : i32
    %c0_i32_0 = arith.constant 0 : i32
    %c0_i32_1 = arith.constant 0 : i32
    return %c0_i32, %c0_i32_0 : i32, i32
  }
  func.func @transform_2(%arg0: i32) -> (i32, i32) {
    %c0_i32 = arith.constant 0 : i32
    %c0_i32_0 = arith.constant 0 : i32
    %c0_i32_1 = arith.constant 0 : i32
    return %c0_i32, %c0_i32_0 : i32, i32
  }
  func.func @transform_3(%arg0: i32) -> (i32, i32) {
    %c0_i32 = arith.constant 0 : i32
    %c0_i32_0 = arith.constant 0 : i32
    %c0_i32_1 = arith.constant 0 : i32
    return %c0_i32, %c0_i32_0 : i32, i32
  }
  func.func @transform_4(%arg0: i32) -> (i32, i32) {
    %c0_i32 = arith.constant 0 : i32
    %c0_i32_0 = arith.constant 0 : i32
    %c0_i32_1 = arith.constant 0 : i32
    return %c0_i32, %c0_i32_0 : i32, i32
  }
  func.func @transform_5(%arg0: i32) -> (i32, i32) {
    %c0_i32 = arith.constant 0 : i32
    %c0_i32_0 = arith.constant 0 : i32
    %c0_i32_1 = arith.constant 0 : i32
    return %c0_i32, %c0_i32_0 : i32, i32
  }
  func.func @transform_6(%arg0: i32) -> (i32, i32) {
    %c0_i32 = arith.constant 0 : i32
    %c0_i32_0 = arith.constant 0 : i32
    %c0_i32_1 = arith.constant 0 : i32
    return %c0_i32, %c0_i32_0 : i32, i32
  }
  func.func @transform_7(%arg0: i32) -> (i32, i32) {
    %c0_i32 = arith.constant 0 : i32
    %c0_i32_0 = arith.constant 0 : i32
    return %arg0, %c0_i32 : i32, i32
  }
}

</mosaic_0001>

<bundles_post_ra>
// kernel: tpu_custom_call.1
= control target key start
LH: loop header
LB: loop body
LE: loop exit
PB: predicated region body
PF: predicated region fallthrough
CT: control target
= control target key end

     0   :  { %s2360_s0 = inlined_call_operand.hbm [shape: bf16[256,128], index: 0, kind: input, shape index: {}]   ;;  %s2361_s1 = inlined_call_operand.hbm [shape: bf16[128,256], index: 1, kind: input, shape index: {}]   ;;  %s2362_s2 = inlined_call_operand.vmem [shape: f32[1,256], index: 2, kind: input, shape index: {}]   ;;  %s2363_s3 = inlined_call_operand.hbm [shape: bf16[256,256], index: 3, kind: input, shape index: {}]   ;;  %s2364_s4 = inlined_call_operand.vmem [shape: f32[1,256], index: 4, kind: input, shape index: {}]   ;;  %s2365_s5 = inlined_call_operand.hbm [shape: bf16[256,128], index: 5, kind: input, shape index: {}]   ;;  %s2366_s6 = inlined_call_operand.vmem [shape: f32[1,128], index: 6, kind: input, shape index: {}]   ;;  %s2367_s7 = inlined_call_operand.hbm [shape: f32[256,128], index: 7, kind: output, shape index: {}]  }
   0x1   :  { %2374 = sst [smem:[#allocation15_spill]] %s2361_s1 }
   0x2   :  { %12 = vsyncpa [#allocation3], 0 }
   0x3   :  { %14 = vsyncpa [#allocation3 + $0x1], 0 }
   0x4   :  { %15 = vsyncpa [#allocation6], 0 }
   0x5   :  { %16 = vsyncpa [#allocation9], 0 }
   0x6   :  { %17 = vsyncpa [#allocation4], 0 }
   0x7   :  { %19 = vsyncpa [#allocation4 + $0x1], 0  ;;  %s1993_s24 = smov 0   ;;  %s1995_s25 = smov 0  }
   0x8   :  { %s1997_s26 = smov 0   ;;  %s1999_s27 = smov 0  }
   0x9 LB: > { %s2014_s28 = sadd.s32 4294967295, %s1939_s27   ;;  %s1406_s29 = sadd.s32 4294967294, %s1939_s27   ;;  %s1939_s27 = sphi %s1999_s27, %s2397_s27   ;;  %s1935_s26 = sphi %s1997_s26, %s2396_s26   ;;  %s1931_s25 = sphi %s1995_s25, %s2395_s25   ;;  %s1927_s24 = sphi %s1993_s24, %s2394_s24  }
   0xa   : > { %p45_p0 = scmp.ne.s32.totalorder %s1931_s25, %s1927_s24  ;;  %p2368_p1 = scmp.eq.s32.totalorder %s2014_s28, 0 }
   0xb   : > { %p201_p3 = scmp.eq.s32.totalorder %s1406_s29, 1  ;;  %p1407_p5 = scmp.ge.s32.totalorder %s1939_s27, 1 }
   0xc   : > { %p2023_p4 = por %p2368_p1, %p45_p0  ;;  %p208_p7 = scmp.lt.s32.totalorder %s1939_s27, 3 }
   0xd   : > { %p2028_p6 = por %p201_p3, %p45_p0  ;;  %s1941_s10 = smov [#allocation5]  }
   0xe   : > { %s2375_s30 = scalar_select %p2023_p4, 1, 0 }
   0xf   : > { %s2376_s8 = scalar_select %p2028_p6, 1, 0 }
  0x10   : > { %p2033_p8 = pnand %p1407_p5, %p208_p7  ;;  %s220_s11 = sshll.u32 %s1941_s10, 4  ;;  %s221_s11 = int_to_ptr.vmem [resolvable:$true] %s220_s11 }
  0x11   : > { %s1942_s13 = smov [#allocation7]   ;;  %s1943_s15 = smov [#allocation8]  }
  0x12   : > { %s2377_s9 = scalar_select %p2033_p8, 1, 0 }
  0x13   : > { %p1597_p9 = pneg %p2033_p8  ;;  %s236_s14 = sshll.u32 %s1942_s13, 4  ;;  %s237_s14 = int_to_ptr.vmem [resolvable:$true] %s236_s14 }
  0x14   : > { %s252_s16 = sshll.u32 %s1943_s15, 4  ;;  %s1772_s17 = scalar_lea.vmem %s221_s11, 2048  ;;  %s253_s16 = int_to_ptr.vmem [resolvable:$true] %s252_s16 }
  0x15   : > { %p2042_p11 = pnand %p1597_p9, %p2368_p1  ;;  %p1773_p13 = scmp.ne.s32.totalorder %s221_s11, %s1772_s17 }
  0x16   : > { %p1780_p5 = scmp.lt.s32.totalorder %s221_s11, %s221_s11  ;;  %p1781_p7 = scmp.lt.s32.totalorder %s1772_s17, %s1772_s17 }
  0x17   : > { %p1763_p12 = pneg %p2042_p11 }
  0x18   : > { %p1782_p9 = por %p1781_p7, %p1780_p5 }
  0x19   : > { %p1775_p0 = pnand %p1773_p13, %p1763_p12 }
  0x1b   : > { %p1776_p3 = pneg %p1775_p0 }
  0x1d   : > { %p1783_p10 = pnand %p1782_p9, %p1776_p3 }
  0x1f   : > { %1786 = shalt.err (!%p1783_p10)
}
  0x20   : > { %s1944_s18 = smov 128   ;;  %s1945_s19 = smov 8  }
  0x21   : > { %s2379_s1 = sld [smem:[#allocation15_spill]]  ;;  %s1798_s22 = scalar_lea.vmem %s237_s14, 4096 }
  0x22   : > { %p1799_p1 = scmp.ne.s32.totalorder %s237_s14, %s1798_s22  ;;  %p1806_p2 = scmp.lt.s32.totalorder %s237_s14, %s237_s14 }
  0x23   : > { %p1807_p6 = scmp.lt.s32.totalorder %s1798_s22, %s1798_s22 }
  0x24   : > { %p1801_p13 = pnand %p1799_p1, %p1763_p12 }
  0x25   : > { %p1808_p5 = por %p1807_p6, %p1806_p2 }
  0x26   : > { %p1802_p0 = pneg %p1801_p13 }
  0x27   : > { %1600 = dma.hbm_to_vmem [thread:$0]  (!%p2042_p11), %s2379_s1, 2048, %s221_s11, [#allocation6], %s1944_s18, %s1944_s18, %s1945_s19  }
  0x28   : > { %p1809_p3 = pnand %p1808_p5, %p1802_p0 }
  0x2a   : > { %1812 = shalt.err (!%p1809_p3)
}
  0x2b   : > { %1603 = dma.hbm_to_vmem [thread:$0]  (!%p2042_p11), %s2363_s3, 4096, %s237_s14, [#allocation6], %s1944_s18, %s1944_s18, %s1945_s19  }
  0x2c   : > { %s1824_s10 = scalar_lea.vmem %s253_s16, 2048  ;;  %p1832_p9 = scmp.lt.s32.totalorder %s253_s16, %s253_s16 }
  0x2d   : > { %p1825_p10 = scmp.ne.s32.totalorder %s253_s16, %s1824_s10  ;;  %p1833_p13 = scmp.lt.s32.totalorder %s1824_s10, %s1824_s10 }
  0x2f   : > { %p1827_p7 = pnand %p1825_p10, %p1763_p12  ;;  %p1834_p4 = por %p1833_p13, %p1832_p9 }
  0x31   : > { %p1828_p1 = pneg %p1827_p7 }
  0x33   : > { %p1835_p2 = pnand %p1834_p4, %p1828_p1 }
  0x35   : > { %1838 = shalt.err (!%p1835_p2)
}
  0x36   : > { %s2370_s11 = smov 64   ;;  %s2371_s13 = smov 4  }
  0x37   : > { %1606 = dma.hbm_to_vmem [thread:$0]  (!%p2042_p11), %s2365_s5, 2048, %s253_s16, [#allocation9], %s2370_s11, %s2370_s11, %s2371_s13  }
  0x38   : > { %s2076_s17 = sadd.s32 1, %s1939_s27   ;;  %s32_s19 = sadd.s32 1, %s1935_s26 }
  0x39   : > { %s29_s18 = ssub.s32 %s1939_s27, %s2076_s17  ;;  %p39_p6 = scmp.ne.s32.totalorder %s1935_s26, %s1931_s25 }
  0x3a   : > { %p30_p4 = scmp.eq.s32.totalorder %s29_s18, 0  ;;  %p40_p12 = scmp.eq.s32.totalorder %s1939_s27, 0 }
  0x3b   : > { %p1618_p0 = scmp.lt.s32.totalorder %s1939_s27, 2  ;;  %p2380_p3 = scmp.eq.s32.totalorder %s2014_s28, 1 }
  0x3c   : > { %s2086_s20 = scalar_select %p30_p4, %s1935_s26, %s32_s19  }
  0x3d   : > { %p41_p5 = por %p40_p12, %p39_p6  ;;  %p2090_p10 = por %p2380_p3, %p39_p6 }
  0x3e   : > { %s269_s21 = sand.u32 1, %s1935_s26   ;;  %s1499_s22 = sshll.u32 %s1939_s27, 10 }
  0x3f   : > { %s2381_s12 = scalar_select %p2090_p10, 1, 0 }
  0x40   : > { %s1412_s16 = sshll.u32 %s269_s21, 6  ;;  %s2099_s10 = scalar_lea.hbm %s2360_s0, %s1499_s22 }
  0x41   : > { %s273_s14 = scalar_lea.vmem [#allocation2], %s1412_s16  ;;  %p2101_p11 = pnand %p1618_p0, %p41_p5 }
  0x42   : > { %s280_s15 = sshll.u32 %s273_s14, 4  ;;  %s2107_s19 = scalar_lea.sflag [#allocation3], %s269_s21  ;;  %s2105_s15 = int_to_ptr.vmem [resolvable:$true] %s280_s15 }
  0x43   : > { %s1839_s11 = scalar_lea.hbm %s2099_s10, 1024  ;;  %p1841_p1 = pneg %p2101_p11 }
  0x44   : > { %p1840_p7 = scmp.ne.s32.totalorder %s2099_s10, %s1839_s11  ;;  %s1844_s16 = scalar_lea.hbm %s2360_s0, 2048 }
  0x45   : > { %p1845_p2 = scmp.lt.s32.totalorder %s2099_s10, %s2360_s0  ;;  %p1846_p4 = scmp.lt.s32.totalorder %s1844_s16, %s1839_s11 }
  0x46   : > { %p1842_p9 = pnand %p1841_p1, %p1840_p7 }
  0x47   : > { %p1847_p6 = por %p1846_p4, %p1845_p2 }
  0x48   : > { %p1843_p13 = pneg %p1842_p9 }
  0x4a   : > { %p1848_p12 = pnand %p1847_p6, %p1843_p13 }
  0x4c   : > { %1851 = shalt.err (!%p1848_p12)
}
  0x4d   : > { %s1852_s21 = scalar_lea.vmem %s2105_s15, 1024  ;;  %s1948_s13 = smov [#allocation2]  }
  0x4e   : > { %p1853_p0 = scmp.ne.s32.totalorder %s2105_s15, %s1852_s21  ;;  %s1857_s1 = sshll.u32 %s1948_s13, 4  ;;  %s1858_s1 = int_to_ptr.vmem [resolvable:$false] %s1857_s1 }
  0x4f   : > { %s1859_s22 = scalar_lea.vmem %s1858_s1, 2048  ;;  %p1860_p7 = scmp.lt.s32.totalorder %s2105_s15, %s1858_s1 }
  0x50   : > { %p1855_p5 = pnand %p1853_p0, %p1841_p1  ;;  %p1861_p9 = scmp.lt.s32.totalorder %s1859_s22, %s1852_s21 }
  0x52   : > { %p1856_p3 = pneg %p1855_p5  ;;  %p1862_p10 = por %p1861_p9, %p1860_p7 }
  0x54   : > { %p1863_p8 = pnand %p1862_p10, %p1856_p3 }
  0x56   : > { %1866 = shalt.err (!%p1863_p8)
}
  0x57   : > { %s2383_s11 = smov 4   ;;  %s2384_s23 = smov 64  }
  0x58   : > { %1610 = dma.hbm_to_vmem [thread:$0]  (!%p2101_p11), %s2099_s10, 1024, %s2105_s15, %s2107_s19, %s2384_s23, %s2384_s23, %s2383_s11  }
  0x59   : > { %p2385_p1 = scmp.ne.s32.totalorder %s2377_s9, 0 }
  0x5a   : > { %s2134_s13 = sand.u32 (!%p2385_p1), 1, %s1931_s25   ;;  %p2386_p8 = scmp.ne.s32.totalorder (!%p2385_p1), %s2375_s30, 0 }
  0x5b   : > { %292 = sbr.rel (%p2385_p1) target bundleno = 821 (0x335), region = 48  ;;  %s1416_s1 = sshll.u32 (!%p2385_p1), %s2134_s13, 6 }
  0x5c   : > { %s295_s16 = scalar_lea.sflag (!%p2385_p1), [#allocation3], %s2134_s13  ;;  %s2138_s29 = scalar_lea.vmem (!%p2385_p1), [#allocation2], %s1416_s1 }
  0x60   : > { %1910 = dma.done.wait (%p2386_p8), %s295_s16, 1024  }
  0x61   : > { %1912 = vsyncadd (%p2386_p8), %s295_s16, 4294966272  ;;  %p2387_p10 = scmp.eq.s32.totalorder %s2014_s28, 0 }
  0x63   : > { %1914 = dma.done.wait (%p2387_p10), [#allocation6], 6144   ;;  %p2388_p11 = pmov %p2387_p10 }
  0x64   : > { %p2389_p13 = pmov %p2387_p10 }
  0x65   : > { %1916 = vsyncadd (%p2388_p11), [#allocation6], 4294961152 }
  0x66   : > { %1918 = dma.done.wait (%p2389_p13), [#allocation9], 2048   ;;  %p2390_p2 = pmov %p2387_p10 }
  0x67   : > { %v1949_v0 = vmov 0   ;;  %v1665_v1 = vld [vmem:[#allocation5 + $0x74] ss:$8 sps:$4 sm:$0xff]   ;;  %v1667_v2 = vld [vmem:[#allocation5 + $0x70] ss:$8 sps:$4 sm:$0xff]   ;;  %v1689_v24 = vld [vmem:[%s2138_s29] sm:$0xff]  }
  0x68   : > { %1920 = vsyncadd (%p2390_p2), [#allocation9], 4294965248  ;;  %548 = vmatprep.mubr.bf16.mxu0 %v1949_v0  ;;  %516 = vmatprep.subr.bf16.mxu0 %v1665_v1  ;;  %v1668_v3 = vld [vmem:[#allocation5 + $0x64] ss:$8 sps:$4 sm:$0xff]   ;;  %v1670_v4 = vld [vmem:[#allocation5 + $0x60] ss:$8 sps:$4 sm:$0xff]  }
  0x69   : > { %517 = vmatpush1.bf16.msra.mxu0 %v1667_v2  ;;  %v1671_v5 = vld [vmem:[#allocation5 + $0x54] ss:$8 sps:$4 sm:$0xff]   ;;  %v1673_v6 = vld [vmem:[#allocation5 + $0x50] ss:$8 sps:$4 sm:$0xff]   ;;  %v1674_v7 = vld [vmem:[#allocation5 + $0x44] ss:$8 sps:$4 sm:$0xff]  }
  0x6a   : > { %518 = vmatprep.subr.bf16.mxu0 %v1668_v3  ;;  %v1676_v8 = vld [vmem:[#allocation5 + $0x40] ss:$8 sps:$4 sm:$0xff]   ;;  %v1677_v9 = vld [vmem:[#allocation5 + $0x34] ss:$8 sps:$4 sm:$0xff]   ;;  %v1679_v10 = vld [vmem:[#allocation5 + $0x30] ss:$8 sps:$4 sm:$0xff]   ;;  %v378_v3 = vlaneseq }
  0x6b   : > { %v1680_v11 = vld [vmem:[#allocation5 + $0x24] ss:$8 sps:$4 sm:$0xff]   ;;  %v1682_v12 = vld [vmem:[#allocation5 + $0x20] ss:$8 sps:$4 sm:$0xff]   ;;  %v1683_v13 = vld [vmem:[#allocation5 + $0x14] ss:$8 sps:$4 sm:$0xff]  }
  0x6c   : > { %v1697_v14 = vld [vmem:[#allocation7 + $0x74] ss:$8 sps:$4 sm:$0xff]   ;;  %v1699_v15 = vld [vmem:[#allocation7 + $0x70] ss:$8 sps:$4 sm:$0xff]   ;;  %v1700_v16 = vld [vmem:[#allocation7 + $0x64] ss:$8 sps:$4 sm:$0xff]  }
  0x6d   : > { %519 = vmatpush1.bf16.msra.mxu0 %v1670_v4  ;;  %881 = vmatprep.subr.bf16.mxu1 %v1697_v14  ;;  %v1702_v17 = vld [vmem:[#allocation7 + $0x60] ss:$8 sps:$4 sm:$0xff]   ;;  %v1685_v18 = vld [vmem:[#allocation5 + $0x10] ss:$8 sps:$4 sm:$0xff]   ;;  %v1703_v19 = vld [vmem:[#allocation7 + $0x54] ss:$8 sps:$4 sm:$0xff]  }
  0x6e   : > { %520 = vmatprep.subr.bf16.mxu0 %v1671_v5  ;;  %882 = vmatpush1.bf16.msra.mxu1 %v1699_v15  ;;  %v1686_v20 = vld [vmem:[#allocation5 + $0x4] ss:$8 sps:$4 sm:$0xff]   ;;  %v1705_v21 = vld [vmem:[#allocation7 + $0x50] ss:$8 sps:$4 sm:$0xff]   ;;  %v1688_v22 = vld [vmem:[#allocation5] ss:$8 sps:$4 sm:$0xff]  }
  0x6f   : > { %883 = vmatprep.subr.bf16.mxu1 %v1700_v16  ;;  %v1706_v23 = vld [vmem:[#allocation7 + $0x44] ss:$8 sps:$4 sm:$0xff]   ;;  %v1708_v25 = vld [vmem:[#allocation7 + $0x40] ss:$8 sps:$4 sm:$0xff]   ;;  %v1709_v26 = vld [vmem:[#allocation7 + $0x34] ss:$8 sps:$4 sm:$0xff]  }
  0x70   : > { %v1711_v27 = vld [vmem:[#allocation7 + $0x30] ss:$8 sps:$4 sm:$0xff]   ;;  %v1712_v28 = vld [vmem:[#allocation7 + $0x24] ss:$8 sps:$4 sm:$0xff]   ;;  %v1714_v30 = vld [vmem:[#allocation7 + $0x20] ss:$8 sps:$4 sm:$0xff]  }
  0x71   : > { %521 = vmatpush1.bf16.msra.mxu0 %v1673_v6  ;;  %v1690_v29 = vld [vmem:[%s2138_s29 + $0x8] sm:$0xff]   ;;  %v1715_v31 = vld [vmem:[#allocation7 + $0x14] ss:$8 sps:$4 sm:$0xff]   ;;  %v1717_v32 = vld [vmem:[#allocation7 + $0x10] ss:$8 sps:$4 sm:$0xff]   ;;  %v2177_v4 = vshrl.u32 %v378_v3, 7 }
  0x72   : > { %522 = vmatprep.subr.bf16.mxu0 %v1674_v7  ;;  %884 = vmatpush1.bf16.msra.mxu1 %v1702_v17  ;;  %v1718_v33 = vld [vmem:[#allocation7 + $0x4] ss:$8 sps:$4 sm:$0xff]   ;;  %v1691_v34 = vld [vmem:[%s2138_s29 + $0x10] sm:$0xff]   ;;  %v1720_v35 = vld [vmem:[#allocation7] ss:$8 sps:$4 sm:$0xff]   ;;  %s1420_s18 = sshll.u32 %s2134_s13, 7 }
  0x73   : > { %885 = vmatprep.subr.bf16.mxu1 %v1703_v19  ;;  %v1721_v36 = vld [vmem:[#allocation7 + $0xf4] ss:$8 sps:$4 sm:$0xff]   ;;  %v1723_v37 = vld [vmem:[#allocation7 + $0xf0] ss:$8 sps:$4 sm:$0xff]   ;;  %v1724_v38 = vld [vmem:[#allocation7 + $0xe4] ss:$8 sps:$4 sm:$0xff]  }
  0x74   : > { %v1692_v39 = vld [vmem:[%s2138_s29 + $0x18] sm:$0xff]   ;;  %v1726_v40 = vld [vmem:[#allocation7 + $0xe0] ss:$8 sps:$4 sm:$0xff]   ;;  %v1730_v43 = vld [vmem:[#allocation7 + $0xc4] ss:$8 sps:$4 sm:$0xff]   ;;  %v384_v5 = vsub.s32 1, %v2177_v4 }
  0x75   : > { %523 = vmatpush1.bf16.msra.mxu0 %v1676_v8  ;;  %v1727_v41 = vld [vmem:[#allocation7 + $0xd4] ss:$8 sps:$4 sm:$0xff]   ;;  %v1729_v42 = vld [vmem:[#allocation7 + $0xd0] ss:$8 sps:$4 sm:$0xff]   ;;  %v1693_v44 = vld [vmem:[%s2138_s29 + $0x20] sm:$0xff]   ;;  %v380_v6 = vsub.s32 0, %v2177_v4 }
  0x76   : > { %524 = vmatprep.subr.bf16.mxu0 %v1677_v9  ;;  %886 = vmatpush1.bf16.msra.mxu1 %v1705_v21  ;;  %v1732_v45 = vld [vmem:[#allocation7 + $0xc0] ss:$8 sps:$4 sm:$0xff]   ;;  %v1733_v46 = vld [vmem:[#allocation7 + $0xb4] ss:$8 sps:$4 sm:$0xff]   ;;  %v1735_v47 = vld [vmem:[#allocation7 + $0xb0] ss:$8 sps:$4 sm:$0xff]  }
  0x77   : > { %887 = vmatprep.subr.bf16.mxu1 %v1706_v23  ;;  %v1694_v48 = vld [vmem:[%s2138_s29 + $0x28] sm:$0xff]   ;;  %v1695_v49 = vld [vmem:[%s2138_s29 + $0x30] sm:$0xff]   ;;  %v1696_v50 = vld [vmem:[%s2138_s29 + $0x38] sm:$0xff]   ;;  %s2277_s21 = scalar_lea.vmem [#allocation10], %s1420_s18  ;;  %s1500_s22 = sshll.u32 %s2014_s28, 11 }
  0x78   : > { %v1736_v51 = vld [vmem:[#allocation7 + $0xa4] ss:$8 sps:$4 sm:$0xff]   ;;  %v1738_v52 = vld [vmem:[#allocation7 + $0xa0] ss:$8 sps:$4 sm:$0xff]   ;;  %v1739_v53 = vld [vmem:[#allocation7 + $0x94] ss:$8 sps:$4 sm:$0xff]   ;;  %s2313_s16 = scalar_lea.hbm %s2367_s7, %s1500_s22 }
  0x79   : > { %525 = vmatpush1.bf16.msra.mxu0 %v1679_v10  ;;  %v1741_v54 = vld [vmem:[#allocation7 + $0x90] ss:$8 sps:$4 sm:$0xff]   ;;  %v1742_v55 = vld [vmem:[#allocation7 + $0x84] ss:$8 sps:$4 sm:$0xff]   ;;  %v1744_v56 = vld [vmem:[#allocation7 + $0x80] ss:$8 sps:$4 sm:$0xff]  }
  0x7a   : > { %526 = vmatprep.subr.bf16.mxu0 %v1680_v11  ;;  %888 = vmatpush1.bf16.msra.mxu1 %v1708_v25  ;;  %v1745_v57 = vld [vmem:[#allocation8 + $0x78] sm:$0xff]   ;;  %v1747_v59 = vld [vmem:[#allocation8 + $0x70] sm:$0xff]   ;;  %v1749_v61 = vld [vmem:[#allocation8 + $0x68] sm:$0xff]   ;;  %s1304_s11 = sshll.u32 %s2277_s21, 4  ;;  %s1291_s29 = scalar_lea.sflag [#allocation4], %s2134_s13  ;;  %s2315_s11 = int_to_ptr.vmem [resolvable:$true] %s1304_s11 }
  0x7b   : > { %889 = vmatprep.subr.bf16.mxu1 %v1709_v26  ;;  %v1746_v58 = vld [vmem:[#allocation8 + $0x38] sm:$0xff]   ;;  %v1748_v60 = vld [vmem:[#allocation8 + $0x30] sm:$0xff]   ;;  %v1750_v62 = vld [vmem:[#allocation8 + $0x28] sm:$0xff]   ;;  %s1867_s30 = scalar_lea.vmem %s2315_s11, 2048  ;;  %p2391_p6 = scmp.ne.s32.totalorder %s2381_s12, 0 }
  0x7c   : > { %v1751_v63 = vld [vmem:[#allocation8 + $0x60] sm:$0xff]   ;;  %v2170_v1 = vld [vmem:[#allocation8 + $0x58] sm:$0xff]   ;;  %p1868_p4 = scmp.ne.s32.totalorder %s2315_s11, %s1867_s30  ;;  %s1950_s28 = smov [#allocation10]  }
  0x7d   : > { %527 = vmatpush1.bf16.msra.mxu0 %v1682_v12  ;;  %v2173_v2 = vld [vmem:[#allocation8 + $0x18] sm:$0xff]   ;;  %v376_v7 = vld [vmem:[%s2362_s2] sm:$0x3]  ;;  %s1871_s9 = sshll.u32 %s1950_s28, 4  ;;  %s1872_s9 = int_to_ptr.vmem [resolvable:$false] %s1871_s9 }
  0x7e   : > { %528 = vmatprep.subr.bf16.mxu0 %v1683_v13  ;;  %890 = vmatpush1.bf16.msra.mxu1 %v1711_v27  ;;  %v2186_v9 = vrot.slane %v376_v7, %v384_v5  ;;  %v2190_v10 = vrot.slane %v376_v7, %v380_v6  ;;  %p1869_p12 = pnand %p1868_p4, %p2391_p6  ;;  %s1873_s10 = scalar_lea.vmem %s1872_s9, 4096 }
  0x7f   : > { %891 = vmatprep.subr.bf16.mxu1 %v1712_v28  ;;  %p1874_p5 = scmp.lt.s32.totalorder %s2315_s11, %s1872_s9  ;;  %p1875_p3 = scmp.lt.s32.totalorder %s1873_s10, %s1867_s30 }
  0x80   : > { %p1870_p0 = pneg %p1869_p12 }
  0x81   : > { %529 = vmatpush1.bf16.msra.mxu0 %v1685_v18  ;;  %p1876_p7 = por %p1875_p3, %p1874_p5 }
  0x82   : > { %530 = vmatprep.subr.bf16.mxu0 %v1686_v20  ;;  %892 = vmatpush1.bf16.msra.mxu1 %v1714_v30 }
  0x83   : > { %893 = vmatprep.subr.bf16.mxu1 %v1715_v31  ;;  %p1877_p9 = pnand %p1876_p7, %p1870_p0 }
  0x85   : > { %531 = vmatpush1.bf16.msra.mxu0 %v1688_v22 }
  0x86   : > { %894 = vmatpush1.bf16.msra.mxu1 %v1717_v32  ;;  %1501 = vmatprep.subr.bf16.mxu0 %v1745_v57 }
  0x87   : > { %895 = vmatprep.subr.bf16.mxu1 %v1718_v33 }
  0x88   : > { %549 = vmatmul.mubr.bf16.vlgmr.msra.gmra.mxu0 %v1689_v24 }
  0x89   : > { %558 = vmatprep.mubr.bf16.mxu0 %v1949_v0  ;;  %1502 = vmatpush3.bf16.msra.mxu0 %v1746_v58 }
  0x8a   : > { %896 = vmatpush1.bf16.msra.mxu1 %v1720_v35  ;;  %1503 = vmatprep.subr.bf16.mxu0 %v1747_v59 }
  0x8b   : > { %897 = vmatprep.subr.bf16.mxu1 %v1721_v36 }
  0x8d   : > { %1504 = vmatpush3.bf16.msra.mxu0 %v1748_v60 }
  0x8e   : > { %898 = vmatpush2.bf16.msra.mxu1 %v1723_v37  ;;  %1505 = vmatprep.subr.bf16.mxu0 %v1749_v61 }
  0x8f   : > { %899 = vmatprep.subr.bf16.mxu1 %v1724_v38 }
  0x90   : > { %559 = vmatmul.mubr.bf16.gmra.mxu0 %v1690_v29 }
  0x91   : > { %568 = vmatprep.mubr.bf16.mxu0 %v1949_v0  ;;  %1506 = vmatpush3.bf16.msra.mxu0 %v1750_v62 }
  0x92   : > { %900 = vmatpush2.bf16.msra.mxu1 %v1726_v40  ;;  %1507 = vmatprep.subr.bf16.mxu0 %v1751_v63 }
  0x93   : > { %901 = vmatprep.subr.bf16.mxu1 %v1727_v41 }
  0x96   : > { %902 = vmatpush2.bf16.msra.mxu1 %v1729_v42 }
  0x97   : > { %903 = vmatprep.subr.bf16.mxu1 %v1730_v43 }
  0x98   : > { %569 = vmatmul.mubr.bf16.gmra.mxu0 %v1691_v34 }
  0x99   : > { %578 = vmatprep.mubr.bf16.mxu0 %v1949_v0 }
  0x9a   : > { %904 = vmatpush2.bf16.msra.mxu1 %v1732_v45 }
  0x9b   : > { %905 = vmatprep.subr.bf16.mxu1 %v1733_v46 }
  0x9e   : > { %906 = vmatpush2.bf16.msra.mxu1 %v1735_v47 }
  0x9f   : > { %907 = vmatprep.subr.bf16.mxu1 %v1736_v51 }
  0xa0   : > { %579 = vmatmul.mubr.bf16.gmra.mxu0 %v1692_v39 }
  0xa1   : > { %588 = vmatprep.mubr.bf16.mxu0 %v1949_v0 }
  0xa2   : > { %908 = vmatpush2.bf16.msra.mxu1 %v1738_v52 }
  0xa3   : > { %909 = vmatprep.subr.bf16.mxu1 %v1739_v53 }
  0xa6   : > { %910 = vmatpush2.bf16.msra.mxu1 %v1741_v54 }
  0xa7   : > { %911 = vmatprep.subr.bf16.mxu1 %v1742_v55 }
  0xa8   : > { %589 = vmatmul.mubr.bf16.gmra.mxu0 %v1693_v44 }
  0xa9   : > { %598 = vmatprep.mubr.bf16.mxu0 %v1949_v0 }
  0xaa   : > { %912 = vmatpush2.bf16.msra.mxu1 %v1744_v56 }
  0xab   : > { %1565 = vmatprep.subr.bf16.mxu1 %v1745_v57 }
  0xb0   : > { %599 = vmatmul.mubr.bf16.gmra.mxu0 %v1694_v48 }
  0xb1   : > { %608 = vmatprep.mubr.bf16.mxu0 %v1949_v0 }
  0xb8   : > { %609 = vmatmul.mubr.bf16.gmra.mxu0 %v1695_v49 }
  0xb9   : > { %618 = vmatprep.mubr.bf16.mxu0 %v1949_v0  ;;  %v2168_v0 = vld [vmem:[#allocation8 + $0x20] sm:$0xff]  }
  0xba   : > { %1508 = vmatpush3.bf16.msra.mxu0 %v2168_v0 }
  0xbb   : > { %1509 = vmatprep.subr.bf16.mxu0 %v2170_v1 }
  0xbe   : > { %1510 = vmatpush3.bf16.msra.mxu0 %v2173_v2 }
  0xc0   : > { %619 = vmatmul.mubr.bf16.gmra.mxu0 %v1696_v50 }
 0x148   : > { %v550_v8 = vpop.f32.mrf.mxu0 }
 0x149   : > { %v551_v15 = vadd.f32 %v550_v8, %v2190_v10 }
 0x14a   : > { %v552_v11 = vpop.f32.mrf.mxu0 }
 0x14b   : > { %v553_v13 = vadd.f32 %v552_v11, %v2186_v9  ;;  %v629_v22 = vmax.f32 %v551_v15, 0.0 }
 0x14c   : > { %v554_v12 = vpop.f32.mrf.mxu0 }
 0x14d   : > { %v555_v14 = vadd.f32 %v554_v12, %v2190_v10  ;;  %v630_v20 = vmax.f32 %v553_v13, 0.0 }
 0x14e   : > { %v556_v16 = vpop.f32.mrf.mxu0 }
 0x14f   : > { %v557_v17 = vadd.f32 %v556_v16, %v2186_v9  ;;  %v631_v18 = vmax.f32 %v555_v14, 0.0 }
 0x150   : > { %v560_v19 = vpop.f32.mrf.mxu0 }
 0x151   : > { %v632_v21 = vmax.f32 %v557_v17, 0.0  ;;  %v661_v25 = vpack.c.bf16 %v631_v18, %v629_v22  ;;  %v561_v29 = vadd.f32 %v560_v19, %v2190_v10 }
 0x152   : > { %v562_v23 = vpop.f32.mrf.mxu0 }
 0x153   : > { %v662_v24 = vpack.c.bf16 %v632_v21, %v630_v20  ;;  %v563_v27 = vadd.f32 %v562_v23, %v2186_v9  ;;  %v633_v36 = vmax.f32 %v561_v29, 0.0 }
 0x154   : > { %v564_v26 = vpop.f32.mrf.mxu0 }
 0x155   : > { %v565_v28 = vadd.f32 %v564_v26, %v2190_v10  ;;  %913 = vmatprep.mubr.bf16.mxu1 %v662_v24  ;;  %v634_v34 = vmax.f32 %v563_v27, 0.0 }
 0x156   : > { %v566_v30 = vpop.f32.mrf.mxu0  ;;  %914 = vmatmul.mubr.bf16.vlgmr.msra.gmra.mxu1 %v661_v25 }
 0x157   : > { %v567_v31 = vadd.f32 %v566_v30, %v2186_v9  ;;  %1573 = vmatpush3.bf16.msra.mxu1 %v1746_v58  ;;  %v635_v32 = vmax.f32 %v565_v28, 0.0 }
 0x158   : > { %v570_v33 = vpop.f32.mrf.mxu0  ;;  %1566 = vmatprep.subr.bf16.mxu1 %v1747_v59 }
 0x159   : > { %v636_v35 = vmax.f32 %v567_v31, 0.0  ;;  %v663_v39 = vpack.c.bf16 %v635_v32, %v633_v36  ;;  %v571_v43 = vadd.f32 %v570_v33, %v2190_v10 }
 0x15a   : > { %v572_v37 = vpop.f32.mrf.mxu0 }
 0x15b   : > { %v664_v38 = vpack.c.bf16 %v636_v35, %v634_v34  ;;  %1574 = vmatpush3.bf16.msra.mxu1 %v1748_v60  ;;  %v573_v41 = vadd.f32 %v572_v37, %v2186_v9  ;;  %v637_v50 = vmax.f32 %v571_v43, 0.0 }
 0x15c   : > { %v574_v40 = vpop.f32.mrf.mxu0  ;;  %1567 = vmatprep.subr.bf16.mxu1 %v1749_v61 }
 0x15d   : > { %v575_v42 = vadd.f32 %v574_v40, %v2190_v10  ;;  %923 = vmatprep.mubr.bf16.mxu1 %v664_v38  ;;  %v638_v48 = vmax.f32 %v573_v41, 0.0 }
 0x15e   : > { %v576_v44 = vpop.f32.mrf.mxu0  ;;  %924 = vmatmul.mubr.bf16.gmra.mxu1 %v663_v39 }
 0x15f   : > { %v577_v45 = vadd.f32 %v576_v44, %v2186_v9  ;;  %1575 = vmatpush3.bf16.msra.mxu1 %v1750_v62  ;;  %v639_v46 = vmax.f32 %v575_v42, 0.0 }
 0x160   : > { %v580_v47 = vpop.f32.mrf.mxu0  ;;  %1568 = vmatprep.subr.bf16.mxu1 %v1751_v63 }
 0x161   : > { %v640_v49 = vmax.f32 %v577_v45, 0.0  ;;  %v665_v53 = vpack.c.bf16 %v639_v46, %v637_v50  ;;  %v581_v57 = vadd.f32 %v580_v47, %v2190_v10 }
 0x162   : > { %v582_v51 = vpop.f32.mrf.mxu0 }
 0x163   : > { %v666_v52 = vpack.c.bf16 %v640_v49, %v638_v48  ;;  %1576 = vmatpush3.bf16.msra.mxu1 %v2168_v0  ;;  %v583_v55 = vadd.f32 %v582_v51, %v2186_v9  ;;  %v641_v0 = vmax.f32 %v581_v57, 0.0 }
 0x164   : > { %v584_v54 = vpop.f32.mrf.mxu0  ;;  %1569 = vmatprep.subr.bf16.mxu1 %v2170_v1 }
 0x165   : > { %v585_v56 = vadd.f32 %v584_v54, %v2190_v10  ;;  %933 = vmatprep.mubr.bf16.mxu1 %v666_v52  ;;  %v642_v62 = vmax.f32 %v583_v55, 0.0 }
 0x166   : > { %v586_v58 = vpop.f32.mrf.mxu0  ;;  %934 = vmatmul.mubr.bf16.gmra.mxu1 %v665_v53 }
 0x167   : > { %v587_v59 = vadd.f32 %v586_v58, %v2186_v9  ;;  %1577 = vmatpush3.bf16.msra.mxu1 %v2173_v2  ;;  %v643_v60 = vmax.f32 %v585_v56, 0.0 }
 0x168   : > { %v590_v61 = vpop.f32.mrf.mxu0 }
 0x169   : > { %v644_v63 = vmax.f32 %v587_v59, 0.0  ;;  %v667_v7 = vpack.c.bf16 %v643_v60, %v641_v0  ;;  %v591_v13 = vadd.f32 %v590_v61, %v2190_v10  ;;  %v1756_v0 = vld [vmem:[#allocation8 + $0x10] sm:$0xff]  }
 0x16a   : > { %v592_v3 = vpop.f32.mrf.mxu0 }
 0x16b   : > { %v668_v1 = vpack.c.bf16 %v644_v63, %v642_v62  ;;  %v593_v11 = vadd.f32 %v592_v3, %v2186_v9  ;;  %v645_v19 = vmax.f32 %v591_v13, 0.0  ;;  %v1755_v63 = vld [vmem:[#allocation8 + $0x50] sm:$0xff]   ;;  %v1757_v3 = vld [vmem:[#allocation8 + $0x48] sm:$0xff]  }
 0x16c   : > { %v594_v8 = vpop.f32.mrf.mxu0  ;;  %1511 = vmatprep.subr.bf16.mxu0 %v1755_v63  ;;  %1570 = vmatprep.subr.bf16.mxu1 %v1755_v63 }
 0x16d   : > { %v595_v12 = vadd.f32 %v594_v8, %v2190_v10  ;;  %943 = vmatprep.mubr.bf16.mxu1 %v668_v1  ;;  %v646_v17 = vmax.f32 %v593_v11, 0.0  ;;  %1512 = vmatpush3.bf16.msra.mxu0 %v1756_v0  ;;  %v1760_v1 = vld [vmem:[#allocation8] sm:$0xff]  }
 0x16e   : > { %v596_v14 = vpop.f32.mrf.mxu0  ;;  %944 = vmatmul.mubr.bf16.gmra.mxu1 %v667_v7  ;;  %1513 = vmatprep.subr.bf16.mxu0 %v1757_v3  ;;  %v709_v7 = vld [vmem:[%s2364_s4] sm:$0x3] }
 0x16f   : > { %v597_v2 = vadd.f32 %v596_v14, %v2186_v9  ;;  %v647_v15 = vmax.f32 %v595_v12, 0.0  ;;  %1578 = vmatpush3.bf16.msra.mxu1 %v1756_v0  ;;  %v2232_v11 = vrot.slane %v709_v7, %v384_v5  ;;  %v2236_v12 = vrot.slane %v709_v7, %v380_v6 }
 0x170   : > { %v600_v16 = vpop.f32.mrf.mxu0  ;;  %1571 = vmatprep.subr.bf16.mxu1 %v1757_v3 }
 0x171   : > { %v648_v18 = vmax.f32 %v597_v2, 0.0  ;;  %v669_v22 = vpack.c.bf16 %v647_v15, %v645_v19  ;;  %v601_v26 = vadd.f32 %v600_v16, %v2190_v10 }
 0x172   : > { %v602_v20 = vpop.f32.mrf.mxu0 }
 0x173   : > { %v670_v21 = vpack.c.bf16 %v648_v18, %v646_v17  ;;  %v603_v24 = vadd.f32 %v602_v20, %v2186_v9  ;;  %v649_v33 = vmax.f32 %v601_v26, 0.0 }
 0x174   : > { %v604_v23 = vpop.f32.mrf.mxu0 }
 0x175   : > { %v605_v25 = vadd.f32 %v604_v23, %v2190_v10  ;;  %953 = vmatprep.mubr.bf16.mxu1 %v670_v21  ;;  %v650_v31 = vmax.f32 %v603_v24, 0.0 }
 0x176   : > { %v606_v27 = vpop.f32.mrf.mxu0  ;;  %954 = vmatmul.mubr.bf16.gmra.mxu1 %v669_v22 }
 0x177   : > { %v607_v28 = vadd.f32 %v606_v27, %v2186_v9  ;;  %v651_v29 = vmax.f32 %v605_v25, 0.0 }
 0x178   : > { %v610_v30 = vpop.f32.mrf.mxu0 }
 0x179   : > { %v652_v32 = vmax.f32 %v607_v28, 0.0  ;;  %v671_v36 = vpack.c.bf16 %v651_v29, %v649_v33  ;;  %v611_v40 = vadd.f32 %v610_v30, %v2190_v10 }
 0x17a   : > { %v612_v34 = vpop.f32.mrf.mxu0 }
 0x17b   : > { %v672_v35 = vpack.c.bf16 %v652_v32, %v650_v31  ;;  %v613_v38 = vadd.f32 %v612_v34, %v2186_v9  ;;  %v653_v47 = vmax.f32 %v611_v40, 0.0 }
 0x17c   : > { %v614_v37 = vpop.f32.mrf.mxu0 }
 0x17d   : > { %v615_v39 = vadd.f32 %v614_v37, %v2190_v10  ;;  %963 = vmatprep.mubr.bf16.mxu1 %v672_v35  ;;  %v654_v45 = vmax.f32 %v613_v38, 0.0 }
 0x17e   : > { %v616_v41 = vpop.f32.mrf.mxu0  ;;  %964 = vmatmul.mubr.bf16.gmra.mxu1 %v671_v36 }
 0x17f   : > { %v617_v42 = vadd.f32 %v616_v41, %v2186_v9  ;;  %v655_v43 = vmax.f32 %v615_v39, 0.0 }
 0x180   : > { %v620_v44 = vpop.f32.mrf.mxu0 }
 0x181   : > { %v656_v46 = vmax.f32 %v617_v42, 0.0  ;;  %v673_v50 = vpack.c.bf16 %v655_v43, %v653_v47  ;;  %v621_v54 = vadd.f32 %v620_v44, %v2190_v10 }
 0x182   : > { %v622_v48 = vpop.f32.mrf.mxu0 }
 0x183   : > { %v674_v49 = vpack.c.bf16 %v656_v46, %v654_v45  ;;  %v623_v52 = vadd.f32 %v622_v48, %v2186_v9  ;;  %v657_v60 = vmax.f32 %v621_v54, 0.0 }
 0x184   : > { %v624_v51 = vpop.f32.mrf.mxu0 }
 0x185   : > { %v625_v53 = vadd.f32 %v624_v51, %v2190_v10  ;;  %973 = vmatprep.mubr.bf16.mxu1 %v674_v49  ;;  %v658_v58 = vmax.f32 %v623_v52, 0.0  ;;  %v1758_v10 = vld [vmem:[#allocation8 + $0x8] sm:$0xff]  }
 0x186   : > { %v626_v55 = vpop.f32.mrf.mxu0  ;;  %974 = vmatmul.mubr.bf16.gmra.mxu1 %v673_v50  ;;  %1514 = vmatpush3.bf16.msra.mxu0 %v1758_v10 }
 0x187   : > { %v627_v56 = vadd.f32 %v626_v55, %v2186_v9  ;;  %v659_v57 = vmax.f32 %v625_v53, 0.0  ;;  %1579 = vmatpush3.bf16.msra.mxu1 %v1758_v10  ;;  %v1759_v9 = vld [vmem:[#allocation8 + $0x40] sm:$0xff]  }
 0x188   : > { %1515 = vmatprep.subr.bf16.mxu0 %v1759_v9  ;;  %1572 = vmatprep.subr.bf16.mxu1 %v1759_v9 }
 0x189   : > { %v660_v59 = vmax.f32 %v627_v56, 0.0  ;;  %v675_v62 = vpack.c.bf16 %v659_v57, %v657_v60 }
 0x18a   : > { %1516 = vmatpush3.bf16.msra.mxu0 %v1760_v1 }
 0x18b   : > { %v676_v61 = vpack.c.bf16 %v660_v59, %v658_v58  ;;  %1580 = vmatpush3.bf16.msra.mxu1 %v1760_v1 }
 0x18d   : > { %983 = vmatprep.mubr.bf16.mxu1 %v676_v61 }
 0x18e   : > { %984 = vmatmul.mubr.bf16.gmra.mxu1 %v675_v62 }
 0x216   : > { %v915_v8 = vpop.f32.mrf.mxu1 }
 0x217   : > { %v916_v16 = vadd.f32 %v915_v8, %v2236_v12 }
 0x218   : > { %v917_v13 = vpop.f32.mrf.mxu1 }
 0x219   : > { %v918_v2 = vadd.f32 %v917_v13, %v2232_v11  ;;  %v994_v22 = vmax.f32 %v916_v16, 0.0 }
 0x21a   : > { %v919_v14 = vpop.f32.mrf.mxu1 }
 0x21b   : > { %v920_v15 = vadd.f32 %v919_v14, %v2236_v12  ;;  %v995_v21 = vmax.f32 %v918_v2, 0.0 }
 0x21c   : > { %v921_v17 = vpop.f32.mrf.mxu1 }
 0x21d   : > { %v922_v18 = vadd.f32 %v921_v17, %v2232_v11  ;;  %v996_v19 = vmax.f32 %v920_v15, 0.0 }
 0x21e   : > { %v925_v20 = vpop.f32.mrf.mxu1 }
 0x21f   : > { %v997_v5 = vmax.f32 %v922_v18, 0.0  ;;  %v1026_v6 = vpack.c.bf16 %v996_v19, %v994_v22  ;;  %v926_v27 = vadd.f32 %v925_v20, %v2236_v12 }
 0x220   : > { %v927_v23 = vpop.f32.mrf.mxu1 }
 0x221   : > { %v1027_v4 = vpack.c.bf16 %v997_v5, %v995_v21  ;;  %v928_v25 = vadd.f32 %v927_v23, %v2232_v11  ;;  %v998_v34 = vmax.f32 %v926_v27, 0.0 }
 0x222   : > { %v929_v24 = vpop.f32.mrf.mxu1 }
 0x223   : > { %v930_v26 = vadd.f32 %v929_v24, %v2236_v12  ;;  %1209 = vmatprep.mubr.bf16.mxu0 %v1027_v4  ;;  %v999_v32 = vmax.f32 %v928_v25, 0.0 }
 0x224   : > { %v931_v28 = vpop.f32.mrf.mxu1  ;;  %1210 = vmatmul.mubr.bf16.vlgmr.msra.gmra.mxu0 %v1026_v6 }
 0x225   : > { %v932_v29 = vadd.f32 %v931_v28, %v2232_v11  ;;  %v1000_v30 = vmax.f32 %v930_v26, 0.0 }
 0x226   : > { %v935_v31 = vpop.f32.mrf.mxu1 }
 0x227   : > { %v1001_v33 = vmax.f32 %v932_v29, 0.0  ;;  %v1028_v37 = vpack.c.bf16 %v1000_v30, %v998_v34  ;;  %v936_v41 = vadd.f32 %v935_v31, %v2236_v12 }
 0x228   : > { %v937_v35 = vpop.f32.mrf.mxu1 }
 0x229   : > { %v1029_v36 = vpack.c.bf16 %v1001_v33, %v999_v32  ;;  %v938_v39 = vadd.f32 %v937_v35, %v2232_v11  ;;  %v1002_v48 = vmax.f32 %v936_v41, 0.0 }
 0x22a   : > { %v939_v38 = vpop.f32.mrf.mxu1 }
 0x22b   : > { %v940_v40 = vadd.f32 %v939_v38, %v2236_v12  ;;  %1217 = vmatprep.mubr.bf16.mxu0 %v1029_v36  ;;  %v1003_v46 = vmax.f32 %v938_v39, 0.0 }
 0x22c   : > { %v941_v42 = vpop.f32.mrf.mxu1  ;;  %1218 = vmatmul.mubr.bf16.gmra.mxu0 %v1028_v37 }
 0x22d   : > { %v942_v43 = vadd.f32 %v941_v42, %v2232_v11  ;;  %v1004_v44 = vmax.f32 %v940_v40, 0.0 }
 0x22e   : > { %v945_v45 = vpop.f32.mrf.mxu1 }
 0x22f   : > { %v1005_v47 = vmax.f32 %v942_v43, 0.0  ;;  %v1030_v51 = vpack.c.bf16 %v1004_v44, %v1002_v48  ;;  %v946_v55 = vadd.f32 %v945_v45, %v2236_v12 }
 0x230   : > { %v947_v49 = vpop.f32.mrf.mxu1 }
 0x231   : > { %v1031_v50 = vpack.c.bf16 %v1005_v47, %v1003_v46  ;;  %v948_v53 = vadd.f32 %v947_v49, %v2232_v11  ;;  %v1006_v62 = vmax.f32 %v946_v55, 0.0 }
 0x232   : > { %v949_v52 = vpop.f32.mrf.mxu1 }
 0x233   : > { %v950_v54 = vadd.f32 %v949_v52, %v2236_v12  ;;  %1225 = vmatprep.mubr.bf16.mxu0 %v1031_v50  ;;  %v1007_v60 = vmax.f32 %v948_v53, 0.0 }
 0x234   : > { %v951_v56 = vpop.f32.mrf.mxu1  ;;  %1226 = vmatmul.mubr.bf16.gmra.mxu0 %v1030_v51 }
 0x235   : > { %v952_v57 = vadd.f32 %v951_v56, %v2232_v11  ;;  %v1008_v58 = vmax.f32 %v950_v54, 0.0 }
 0x236   : > { %v955_v59 = vpop.f32.mrf.mxu1 }
 0x237   : > { %v1009_v61 = vmax.f32 %v952_v57, 0.0  ;;  %v1032_v3 = vpack.c.bf16 %v1008_v58, %v1006_v62  ;;  %v956_v7 = vadd.f32 %v955_v59, %v2236_v12  ;;  %v2274_v59 = vld [vmem:[%s2366_s6] ss:$0 sm:$0xff] }
 0x238   : > { %v957_v63 = vpop.f32.mrf.mxu1 }
 0x239   : > { %v1033_v0 = vpack.c.bf16 %v1009_v61, %v1007_v60  ;;  %v958_v9 = vadd.f32 %v957_v63, %v2232_v11  ;;  %v1010_v17 = vmax.f32 %v956_v7, 0.0 }
 0x23a   : > { %v959_v10 = vpop.f32.mrf.mxu1 }
 0x23b   : > { %v960_v1 = vadd.f32 %v959_v10, %v2236_v12  ;;  %1233 = vmatprep.mubr.bf16.mxu0 %v1033_v0  ;;  %v1011_v15 = vmax.f32 %v958_v9, 0.0 }
 0x23c   : > { %v961_v8 = vpop.f32.mrf.mxu1  ;;  %1234 = vmatmul.mubr.bf16.gmra.mxu0 %v1032_v3 }
 0x23d   : > { %v962_v13 = vadd.f32 %v961_v8, %v2232_v11  ;;  %v1012_v14 = vmax.f32 %v960_v1, 0.0 }
 0x23e   : > { %v965_v2 = vpop.f32.mrf.mxu1 }
 0x23f   : > { %v1013_v16 = vmax.f32 %v962_v13, 0.0  ;;  %v1034_v20 = vpack.c.bf16 %v1012_v14, %v1010_v17  ;;  %v966_v23 = vadd.f32 %v965_v2, %v2236_v12 }
 0x240   : > { %v967_v18 = vpop.f32.mrf.mxu1 }
 0x241   : > { %v1035_v19 = vpack.c.bf16 %v1013_v16, %v1011_v15  ;;  %v968_v5 = vadd.f32 %v967_v18, %v2232_v11  ;;  %v1014_v28 = vmax.f32 %v966_v23, 0.0 }
 0x242   : > { %v969_v21 = vpop.f32.mrf.mxu1 }
 0x243   : > { %v970_v22 = vadd.f32 %v969_v21, %v2236_v12  ;;  %1241 = vmatprep.mubr.bf16.mxu0 %v1035_v19  ;;  %v1015_v26 = vmax.f32 %v968_v5, 0.0 }
 0x244   : > { %v971_v4 = vpop.f32.mrf.mxu1  ;;  %1242 = vmatmul.mubr.bf16.gmra.mxu0 %v1034_v20 }
 0x245   : > { %v972_v6 = vadd.f32 %v971_v4, %v2232_v11  ;;  %v1016_v24 = vmax.f32 %v970_v22, 0.0 }
 0x246   : > { %v975_v25 = vpop.f32.mrf.mxu1 }
 0x247   : > { %v1017_v27 = vmax.f32 %v972_v6, 0.0  ;;  %v1036_v31 = vpack.c.bf16 %v1016_v24, %v1014_v28  ;;  %v976_v35 = vadd.f32 %v975_v25, %v2236_v12 }
 0x248   : > { %v977_v29 = vpop.f32.mrf.mxu1 }
 0x249   : > { %v1037_v30 = vpack.c.bf16 %v1017_v27, %v1015_v26  ;;  %v978_v33 = vadd.f32 %v977_v29, %v2232_v11  ;;  %v1018_v42 = vmax.f32 %v976_v35, 0.0 }
 0x24a   : > { %v979_v32 = vpop.f32.mrf.mxu1 }
 0x24b   : > { %v980_v34 = vadd.f32 %v979_v32, %v2236_v12  ;;  %1249 = vmatprep.mubr.bf16.mxu0 %v1037_v30  ;;  %v1019_v40 = vmax.f32 %v978_v33, 0.0 }
 0x24c   : > { %v981_v36 = vpop.f32.mrf.mxu1  ;;  %1250 = vmatmul.mubr.bf16.gmra.mxu0 %v1036_v31 }
 0x24d   : > { %v982_v37 = vadd.f32 %v981_v36, %v2232_v11  ;;  %v1020_v38 = vmax.f32 %v980_v34, 0.0 }
 0x24e   : > { %v985_v39 = vpop.f32.mrf.mxu1 }
 0x24f   : > { %v1021_v41 = vmax.f32 %v982_v37, 0.0  ;;  %v1038_v45 = vpack.c.bf16 %v1020_v38, %v1018_v42  ;;  %v986_v49 = vadd.f32 %v985_v39, %v2236_v12 }
 0x250   : > { %v987_v43 = vpop.f32.mrf.mxu1 }
 0x251   : > { %v1039_v44 = vpack.c.bf16 %v1021_v41, %v1019_v40  ;;  %v988_v47 = vadd.f32 %v987_v43, %v2232_v11  ;;  %v1022_v55 = vmax.f32 %v986_v49, 0.0 }
 0x252   : > { %v989_v46 = vpop.f32.mrf.mxu1 }
 0x253   : > { %v990_v48 = vadd.f32 %v989_v46, %v2236_v12  ;;  %1257 = vmatprep.mubr.bf16.mxu1 %v1039_v44  ;;  %v1023_v53 = vmax.f32 %v988_v47, 0.0 }
 0x254   : > { %v991_v50 = vpop.f32.mrf.mxu1  ;;  %1258 = vmatmul.mubr.bf16.vlgmr.msra.gmra.mxu1 %v1038_v45 }
 0x255   : > { %v992_v51 = vadd.f32 %v991_v50, %v2232_v11  ;;  %v1024_v52 = vmax.f32 %v990_v48, 0.0 }
 0x257   : > { %v1025_v54 = vmax.f32 %v992_v51, 0.0  ;;  %v1040_v57 = vpack.c.bf16 %v1024_v52, %v1022_v55 }
 0x259   : > { %v1041_v56 = vpack.c.bf16 %v1025_v54, %v1023_v53 }
 0x25b   : > { %1265 = vmatprep.mubr.bf16.mxu1 %v1041_v56 }
 0x25c   : > { %1266 = vmatmul.mubr.bf16.gmra.mxu1 %v1040_v57 }
 0x2e4   : > { %v1517_v58 = vpop.f32.mrf.mxu0 }
 0x2e6   : > { %v1518_v12 = vpop.f32.mrf.mxu0 }
 0x2e7   : > { %v1519_v60 = vadd.f32 %v1518_v12, %v1517_v58 }
 0x2e8   : > { %v1520_v61 = vpop.f32.mrf.mxu0 }
 0x2e9   : > { %v1212_v11 = vadd.f32 %v1519_v60, %v2274_v59 }
 0x2ea   : > { %v1521_v62 = vpop.f32.mrf.mxu0 }
 0x2eb   : > { %1274 = vst [vmem:[%s2277_s21] sm:$0xff] %v1212_v11  ;;  %v1522_v63 = vadd.f32 %v1521_v62, %v1520_v61 }
 0x2ec   : > { %v1523_v0 = vpop.f32.mrf.mxu0 }
 0x2ed   : > { %v1215_v3 = vadd.f32 %v1522_v63, %v2274_v59 }
 0x2ee   : > { %v1524_v10 = vpop.f32.mrf.mxu0 }
 0x2ef   : > { %1275 = vst [vmem:[%s2277_s21 + $0x8] sm:$0xff] %v1215_v3  ;;  %v1525_v9 = vadd.f32 %v1524_v10, %v1523_v0 }
 0x2f0   : > { %v1526_v1 = vpop.f32.mrf.mxu0 }
 0x2f1   : > { %v1220_v7 = vadd.f32 %v1525_v9, %v2274_v59 }
 0x2f2   : > { %v1527_v8 = vpop.f32.mrf.mxu0 }
 0x2f3   : > { %1276 = vst [vmem:[%s2277_s21 + $0x10] sm:$0xff] %v1220_v7  ;;  %v1528_v13 = vadd.f32 %v1527_v8, %v1526_v1 }
 0x2f4   : > { %v1529_v14 = vpop.f32.mrf.mxu0 }
 0x2f5   : > { %v1223_v2 = vadd.f32 %v1528_v13, %v2274_v59 }
 0x2f6   : > { %v1530_v15 = vpop.f32.mrf.mxu0 }
 0x2f7   : > { %1277 = vst [vmem:[%s2277_s21 + $0x18] sm:$0xff] %v1223_v2  ;;  %v1531_v16 = vadd.f32 %v1530_v15, %v1529_v14 }
 0x2f8   : > { %v1532_v17 = vpop.f32.mrf.mxu0 }
 0x2f9   : > { %v1228_v18 = vadd.f32 %v1531_v16, %v2274_v59 }
 0x2fa   : > { %v1533_v19 = vpop.f32.mrf.mxu0 }
 0x2fb   : > { %1278 = vst [vmem:[%s2277_s21 + $0x20] sm:$0xff] %v1228_v18  ;;  %v1534_v20 = vadd.f32 %v1533_v19, %v1532_v17 }
 0x2fc   : > { %v1535_v21 = vpop.f32.mrf.mxu0 }
 0x2fd   : > { %v1231_v5 = vadd.f32 %v1534_v20, %v2274_v59 }
 0x2fe   : > { %v1536_v22 = vpop.f32.mrf.mxu0 }
 0x2ff   : > { %1279 = vst [vmem:[%s2277_s21 + $0x28] sm:$0xff] %v1231_v5  ;;  %v1537_v23 = vadd.f32 %v1536_v22, %v1535_v21 }
 0x300   : > { %v1538_v4 = vpop.f32.mrf.mxu0 }
 0x301   : > { %v1236_v6 = vadd.f32 %v1537_v23, %v2274_v59 }
 0x302   : > { %v1539_v24 = vpop.f32.mrf.mxu0 }
 0x303   : > { %1280 = vst [vmem:[%s2277_s21 + $0x30] sm:$0xff] %v1236_v6  ;;  %v1540_v25 = vadd.f32 %v1539_v24, %v1538_v4 }
 0x304   : > { %v1541_v26 = vpop.f32.mrf.mxu0 }
 0x305   : > { %v1239_v27 = vadd.f32 %v1540_v25, %v2274_v59 }
 0x306   : > { %v1542_v28 = vpop.f32.mrf.mxu0 }
 0x307   : > { %1281 = vst [vmem:[%s2277_s21 + $0x38] sm:$0xff] %v1239_v27  ;;  %v1543_v29 = vadd.f32 %v1542_v28, %v1541_v26 }
 0x308   : > { %v1544_v30 = vpop.f32.mrf.mxu0 }
 0x309   : > { %v1244_v31 = vadd.f32 %v1543_v29, %v2274_v59 }
 0x30a   : > { %v1545_v32 = vpop.f32.mrf.mxu0 }
 0x30b   : > { %1282 = vst [vmem:[%s2277_s21 + $0x40] sm:$0xff] %v1244_v31  ;;  %v1546_v33 = vadd.f32 %v1545_v32, %v1544_v30 }
 0x30c   : > { %v1547_v34 = vpop.f32.mrf.mxu0 }
 0x30d   : > { %v1247_v35 = vadd.f32 %v1546_v33, %v2274_v59 }
 0x30e   : > { %v1548_v36 = vpop.f32.mrf.mxu0 }
 0x30f   : > { %1283 = vst [vmem:[%s2277_s21 + $0x48] sm:$0xff] %v1247_v35  ;;  %v1549_v37 = vadd.f32 %v1548_v36, %v1547_v34 }
 0x310   : > { %v1550_v38 = vpop.f32.mrf.mxu0 }
 0x311   : > { %v1252_v39 = vadd.f32 %v1549_v37, %v2274_v59 }
 0x312   : > { %v1551_v40 = vpop.f32.mrf.mxu0 }
 0x313   : > { %1284 = vst [vmem:[%s2277_s21 + $0x50] sm:$0xff] %v1252_v39  ;;  %v1552_v41 = vadd.f32 %v1551_v40, %v1550_v38 }
 0x314   : > { %v1553_v42 = vpop.f32.mrf.mxu1 }
 0x315   : > { %v1255_v43 = vadd.f32 %v1552_v41, %v2274_v59 }
 0x316   : > { %v1554_v44 = vpop.f32.mrf.mxu1 }
 0x317   : > { %1285 = vst [vmem:[%s2277_s21 + $0x58] sm:$0xff] %v1255_v43  ;;  %v1555_v45 = vadd.f32 %v1554_v44, %v1553_v42 }
 0x318   : > { %v1556_v46 = vpop.f32.mrf.mxu1 }
 0x319   : > { %v1260_v47 = vadd.f32 %v1555_v45, %v2274_v59 }
 0x31a   : > { %v1557_v48 = vpop.f32.mrf.mxu1 }
 0x31b   : > { %1286 = vst [vmem:[%s2277_s21 + $0x60] sm:$0xff] %v1260_v47  ;;  %v1558_v49 = vadd.f32 %v1557_v48, %v1556_v46 }
 0x31c   : > { %v1559_v50 = vpop.f32.mrf.mxu1 }
 0x31d   : > { %v1263_v51 = vadd.f32 %v1558_v49, %v2274_v59 }
 0x31e   : > { %v1560_v52 = vpop.f32.mrf.mxu1 }
 0x31f   : > { %1287 = vst [vmem:[%s2277_s21 + $0x68] sm:$0xff] %v1263_v51  ;;  %v1561_v53 = vadd.f32 %v1560_v52, %v1559_v50 }
 0x320   : > { %v1562_v54 = vpop.f32.mrf.mxu1 }
 0x321   : > { %v1268_v55 = vadd.f32 %v1561_v53, %v2274_v59 }
 0x322   : > { %v1563_v56 = vpop.f32.mrf.mxu1 }
 0x323   : > { %1288 = vst [vmem:[%s2277_s21 + $0x70] sm:$0xff] %v1268_v55  ;;  %v1564_v57 = vadd.f32 %v1563_v56, %v1562_v54 }
 0x325   : > { %v1271_v58 = vadd.f32 %v1564_v57, %v2274_v59 }
 0x327   : > { %1289 = vst [vmem:[%s2277_s21 + $0x78] sm:$0xff] %v1271_v58 }
 0x328   : > { %1880 = shalt.err (!%p1877_p9)
}
 0x329   : > { %s1881_s15 = scalar_lea.hbm %s2313_s16, 2048  ;;  %s1885_s14 = scalar_lea.hbm %s2367_s7, 4096 }
 0x32a   : > { %p1882_p1 = scmp.ne.s32.totalorder %s2313_s16, %s1881_s15  ;;  %p1886_p11 = scmp.lt.s32.totalorder %s2313_s16, %s2367_s7 }
 0x32b   : > { %p1887_p13 = scmp.lt.s32.totalorder %s1885_s14, %s1881_s15 }
 0x32c   : > { %p1883_p8 = pnand %p1882_p1, %p2391_p6 }
 0x32d   : > { %p1888_p2 = por %p1887_p13, %p1886_p11 }
 0x32e   : > { %p1884_p10 = pneg %p1883_p8 }
 0x330   : > { %p1889_p4 = pnand %p1888_p2, %p1884_p10 }
 0x332   : > { %1892 = shalt.err (!%p1889_p4)
}
 0x333   : > { %s1951_s23 = smov 128   ;;  %s1952_s1 = smov 8  }
 0x334   : > { %1595 = dma.vmem_to_hbm [thread:$0]  (%p2391_p6), %s2315_s11, 2048, %s2313_s16, %s1291_s29, %s1951_s23, %s1951_s23, %s1952_s1  }
 0x335 PF: > { %s1319_s30 = sand.u32 1, %s1927_s24   ;;  %p2392_p12 = scmp.ne.s32.totalorder %s2376_s8, 0 }
 0x336   : > { %p2393_p0 = scmp.ge.s32.totalorder %s1939_s27, 2  ;;  %s1320_s28 = scalar_lea.sflag [#allocation4], %s1319_s30 }
 0x338   : > { %p1612_p5 = pnand %p2393_p0, %p2392_p12 }
 0x33a   : > { %p1613_p3 = pneg %p1612_p5 }
 0x33c   : > { %1922 = dma.done.wait (%p1613_p3), %s1320_s28, 2048  }
 0x33d   : > { %1924 = vsyncadd (%p1613_p3), %s1320_s28, 4294965248  ;;  %p22_p7 = scmp.ge.s32.totalorder %s2076_s17, 4   ;;  %s2394_s24 = smov %s1931_s25 }
 0x33e   : > { %s2395_s25 = smov %s1935_s26  ;;  %s2396_s26 = smov %s2086_s20 }
 0x33f   : > { %s2397_s27 = smov %s2076_s17  ;;  %24 = sbr.rel (!%p22_p7) target bundleno = 9 (0x9), region = 105 }
 0x344   :  { %1325 = vsyncpa [#allocation3], 1 }
 0x345   :  { %1327 = vsyncpa [#allocation3 + $0x1], 1 }
 0x346   :  { %1328 = vsyncpa [#allocation6], 1 }
 0x347   :  { %1329 = vsyncpa [#allocation9], 1 }
 0x348   :  { %1330 = vsyncpa [#allocation4], 1 }
 0x349   :  { %1332 = vsyncpa [#allocation4 + $0x1], 1 }

</bundles_post_ra>
